<compile_context>
chip_gen: v7x
topology: tpu7x:2x2x1
jax: 0.10.0
libtpu: 0.0.40
codegen_flags: <defaults>
</compile_context>

<pallas_src>
import functools
import math

import jax
import jax.numpy as jnp
from jax.experimental import pallas as pl
from jax.experimental.pallas import tpu as pltpu

_LANES = 128
_STATS_LANES = 2 * _LANES            # [0,128): exp-sum partials, [128,256): cos@label partials
_VMEM_LIMIT = 32 * 1024 * 1024       # explicit scoped-VMEM limit (safe on v5e/v6e/v7x)
_MAIN_VMEM_BUDGET = 24 * 1024 * 1024
_PROLOGUE_VMEM_BUDGET = 16 * 1024 * 1024


def _round_up(x, m):
    return ((x + m - 1) // m) * m


def _pick_tile(dim, preferred, align):
    """Largest multiple of `align` that divides `dim` and is <= preferred, else dim."""
    if dim <= preferred:
        return dim
    t = (preferred // align) * align
    while t >= align:
        if dim % t == 0:
            return t
        t -= align
    return dim


# --------------------------------------------------------------------------- #
# Kernels
# --------------------------------------------------------------------------- #
def _row_normalize_kernel(x_ref, out_ref):
    """F.normalize(p=2, eps=1e-12) along the last axis (EUP rsqrt, no divide)."""
    x = x_ref[...].astype(jnp.float32)
    sumsq = jnp.sum(x * x, axis=-1, keepdims=True)
    out_ref[...] = (x * jax.lax.rsqrt(jnp.maximum(sumsq, 1e-24))).astype(out_ref.dtype)


def _adacos_infer_kernel(xn_ref, wnt_ref, logits_ref):
    """Logits-only path: xn (TB,F) @ wnT (F,TC); both grid axes 'parallel'."""
    logits_ref[...] = jnp.dot(xn_ref[...], wnt_ref[...],
                              preferred_element_type=jnp.float32)


def _adacos_train_kernel(s_ref, label_ref, xn_ref, wnt_ref, logits_ref, stats_ref):
    """Grid (batch_tiles, class_tiles); class axis is the stats-accumulation axis.

    s_ref      : (1,)   f32 SMEM  -- current AdaCos scale
    label_ref  : (TB,1) i32       -- target class per row
    xn_ref     : (TB,F)           -- pre-normalized x (same block for every class tile)
    wnt_ref    : (F,TC)           -- pre-normalized W, transposed, streamed over class tiles
    logits_ref : (TB,TC) f32 out  -- cos(theta) logits tile
    stats_ref  : (TB,256) f32 out -- lane-partial accumulators (resident across class tiles)
    """
    j = pl.program_id(1)

    @pl.when(j == 0)
    def _():
        stats_ref[...] = jnp.zeros_like(stats_ref)

    logits = jnp.dot(xn_ref[...], wnt_ref[...], preferred_element_type=jnp.float32)
    logits_ref[...] = logits

    s = s_ref[0]
    tb, tc = logits.shape
    cls_ids = jax.lax.broadcasted_iota(jnp.int32, (tb, tc), 1) + j * tc
    onehot = cls_ids == label_ref[...]                 # (TB, TC) bool

    # exp over ALL classes (target / padded classes are corrected in the glue).
    exp_all = jnp.exp(s * logits)                      # EUP
    cos_lab = jnp.where(onehot, logits, 0.0)           # one nonzero lane per row

    # Lane-aligned VALU folds into 128-wide partials (no cross-lane XLU work here).
    exp_part = jnp.zeros((tb, _LANES), jnp.float32)
    cos_part = jnp.zeros((tb, _LANES), jnp.float32)
    for k in range(tc // _LANES):                      # static trip count
        exp_part = exp_part + exp_all[:, k * _LANES:(k + 1) * _LANES]
        cos_part = cos_part + cos_lab[:, k * _LANES:(k + 1) * _LANES]
    stats_ref[:, pl.ds(0, _LANES)] = stats_ref[:, pl.ds(0, _LANES)] + exp_part
    stats_ref[:, pl.ds(_LANES, _LANES)] = stats_ref[:, pl.ds(_LANES, _LANES)] + cos_part


def _scale_kernel(s_ref, logits_ref, out_ref):
    """Elementwise output = s_new * logits (in place via input_output_aliases)."""
    # TODO(synk): if a downstream consumer (softmax/CE) exists, fuse this multiply
    # there instead of a standalone pass to save one B*C read+write of HBM.
    out_ref[...] = s_ref[0] * logits_ref[...]


# --------------------------------------------------------------------------- #
# Wrapper
# --------------------------------------------------------------------------- #
def _choose_batch_tile(batch):
    b8 = _round_up(batch, 8)
    if b8 <= 8:
        return b8
    if b8 <= 512:
        return _round_up((b8 + 1) // 2, 8)   # >=2 batch tiles: feeds both v7x TensorCores
    return 256


def _choose_class_tile(tb, feat_p, n_classes, mxu_bytes):
    tc = min(512, _round_up(n_classes, _LANES))
    while tc > _LANES:
        need = 2 * (tb * feat_p * mxu_bytes        # xn tile (double-buffered, conservative)
                    + feat_p * tc * mxu_bytes      # wnT tile
                    + tb * tc * 4                  # logits tile
                    + tb * _STATS_LANES * 4)       # stats tile
        if need <= _MAIN_VMEM_BUDGET:
            break
        tc -= _LANES
    return tc


def _row_normalize(a, out_dtype):
    rows, feat = a.shape
    out_bytes = jnp.dtype(out_dtype).itemsize
    pref = max(8, min(256,
                      (_PROLOGUE_VMEM_BUDGET // (2 * feat * (4 + out_bytes)) // 8) * 8))
    tr = _pick_tile(rows, pref, 8)
    return pl.pallas_call(
        _row_normalize_kernel,
        out_shape=jax.ShapeDtypeStruct((rows, feat), out_dtype),
        grid_spec=pltpu.PrefetchScalarGridSpec(
            num_scalar_prefetch=0,
            grid=(rows // tr,),
            in_specs=[pl.BlockSpec((tr, feat), lambda i: (i, 0))],
            out_specs=pl.BlockSpec((tr, feat), lambda i: (i, 0)),
        ),
        compiler_params=pltpu.CompilerParams(
            dimension_semantics=("parallel",),
            vmem_limit_bytes=_VMEM_LIMIT),
    )(a)


def adacos_forward(x, W, label=None, s_init=None, *, tb=None, tc=None,
                   mxu_dtype=jnp.float32):
    """Replicates AdaCos.forward.

    Returns logits if label is None, else (output, s_new) where s_new is the
    updated adaptive scale (PyTorch keeps it in self.s).

    mxu_dtype=jnp.bfloat16 is recommended on v6e/v7x (bf16-native MXU, halves
    the streamed-W footprint) at ~1e-3 relative accuracy cost on cos values.
    """
    batch, feat = x.shape
    n_classes = W.shape[0]
    if s_init is None:
        s_init = math.sqrt(2.0) * math.log(n_classes - 1)
    s_cur = jnp.asarray(s_init, jnp.float32)

    x = jnp.asarray(x, jnp.float32)
    W = jnp.asarray(W, jnp.float32)
    mxu_bytes = jnp.dtype(mxu_dtype).itemsize

    # Zero-pad features to a 128-lane multiple (zero cols are inert for norms/dots).
    feat_p = _round_up(feat, _LANES)

    # Per-generation-safe tile selection (budgeted against ~24 MiB working set).
    tb = _round_up(tb, 8) if tb else _choose_batch_tile(batch)
    tc = _round_up(tc, _LANES) if tc else _choose_class_tile(tb, feat_p, n_classes, mxu_bytes)
    batch_p = _round_up(batch, tb)
    classes_p = _round_up(n_classes, tc)

    x = jnp.pad(x, ((0, batch_p - batch), (0, feat_p - feat)))
    W = jnp.pad(W, ((0, classes_p - n_classes), (0, feat_p - feat)))

    # Prologue: normalize rows ONCE, emit in MXU operand dtype; feed W transposed
    # (F, C) so the main dot contracts naturally with classes lane-dense.
    xn = _row_normalize(x, mxu_dtype)                  # (batch_p, feat_p)
    wnt = _row_normalize(W, mxu_dtype).T               # (feat_p, classes_p) -- XLA transpose, once

    grid = (batch_p // tb, classes_p // tc)
    xn_spec = pl.BlockSpec((tb, feat_p), lambda i, j: (i, 0))
    # NOTE(v5e): if profiling shows this DMA exposed, add pipeline_mode=pl.Buffered(3)
    # here (do not port that to v7x for large F).
    wnt_spec = pl.BlockSpec((feat_p, tc), lambda i, j: (0, j))
    logits_spec = pl.BlockSpec((tb, tc), lambda i, j: (i, j))

    if label is None:
        logits = pl.pallas_call(
            _adacos_infer_kernel,
            out_shape=jax.ShapeDtypeStruct((batch_p, classes_p), jnp.float32),
            grid_spec=pltpu.PrefetchScalarGridSpec(
                num_scalar_prefetch=0, grid=grid,
                in_specs=[xn_spec, wnt_spec],
                out_specs=logits_spec),
            compiler_params=pltpu.CompilerParams(
                dimension_semantics=("parallel", "parallel"),
                vmem_limit_bytes=_VMEM_LIMIT),
        )(xn, wnt)
        return logits[:batch, :n_classes]

    label_arr = jnp.asarray(label).reshape(batch).astype(jnp.int32)
    label_arr = jnp.pad(label_arr, (0, batch_p - batch)).reshape(batch_p, 1)
    s_arr = s_cur.reshape(1)

    logits, stats = pl.pallas_call(
        _adacos_train_kernel,
        out_shape=(
            jax.ShapeDtypeStruct((batch_p, classes_p), jnp.float32),
            jax.ShapeDtypeStruct((batch_p, _STATS_LANES), jnp.float32),
        ),
        grid_spec=pltpu.PrefetchScalarGridSpec(
            num_scalar_prefetch=0, grid=grid,
            in_specs=[
                pl.BlockSpec(memory_space=pltpu.MemorySpace.SMEM),     # s (scalar)
                pl.BlockSpec((tb, 1), lambda i, j: (i, 0)),            # label
                xn_spec,                                               # normalized x
                wnt_spec,                                              # normalized W^T
            ],
            out_specs=(
                logits_spec,
                pl.BlockSpec((tb, _STATS_LANES), lambda i, j: (i, 0)), # resident stats
            )),
        compiler_params=pltpu.CompilerParams(
            dimension_semantics=("parallel", "arbitrary"),
            vmem_limit_bytes=_VMEM_LIMIT),
    )(s_arr, label_arr, xn, wnt)

    # --- scalar statistics glue (mirrors the torch.no_grad() block) ---
    # TODO(synk): median/arccos/log over the (batch,)-sized stats stays in plain
    # JAX; it is O(batch) scalar work with no useful Pallas mapping.
    stats = stats[:batch]
    row_b_total = jnp.sum(stats[:, :_LANES], axis=-1)
    cos_lab = jnp.sum(stats[:, _LANES:], axis=-1)
    # Kernel accumulated exp(s*logit) over ALL padded classes; subtract the target
    # class and the zero-logit padded classes (each contributes exp(s*0) == 1).
    row_b = row_b_total - jnp.exp(s_cur * cos_lab) - jnp.float32(classes_p - n_classes)
    b_avg = jnp.sum(row_b) / batch
    theta_lab = jnp.arccos(jnp.clip(cos_lab, -1.0 + 1e-7, 1.0 - 1e-7))
    # torch.median returns the lower of the two middle values for even counts.
    theta_med = jnp.sort(theta_lab)[(batch - 1) // 2]
    s_new = jnp.log(b_avg) / jnp.cos(
        jnp.minimum(jnp.float32(math.pi / 4.0), theta_med))
    s_new_arr = s_new.reshape(1).astype(jnp.float32)

    # --- final scale: lane-dense tiles, applied in place (logits buffer aliased) ---
    tcs = _pick_tile(classes_p, 2048, _LANES)
    out = pl.pallas_call(
        _scale_kernel,
        out_shape=jax.ShapeDtypeStruct((batch_p, classes_p), jnp.float32),
        grid_spec=pltpu.PrefetchScalarGridSpec(
            num_scalar_prefetch=0,
            grid=(batch_p // tb, classes_p // tcs),
            in_specs=[
                pl.BlockSpec(memory_space=pltpu.MemorySpace.SMEM),
                pl.BlockSpec((tb, tcs), lambda i, j: (i, j)),
            ],
            out_specs=pl.BlockSpec((tb, tcs), lambda i, j: (i, j)),
        ),
        input_output_aliases={1: 0},
        compiler_params=pltpu.CompilerParams(
            dimension_semantics=("parallel", "parallel"),
            vmem_limit_bytes=_VMEM_LIMIT),
    )(s_new_arr, logits)
    return out[:batch, :n_classes], s_new


# --------------------------------------------------------------------------- #
# Pure-JAX reference for validation
# --------------------------------------------------------------------------- #
def _reference_forward(x, W, label, s_init):
    hi = jax.lax.Precision.HIGHEST
    xn = x / jnp.maximum(jnp.linalg.norm(x, axis=-1, keepdims=True), 1e-12)
    wn = W / jnp.maximum(jnp.linalg.norm(W, axis=-1, keepdims=True), 1e-12)
    logits = jnp.dot(xn, wn.T, precision=hi)
    if label is None:
        return logits
    theta = jnp.arccos(jnp.clip(logits, -1.0 + 1e-7, 1.0 - 1e-7))
    onehot = jax.nn.one_hot(label, W.shape[0], dtype=logits.dtype)
    b_avg = jnp.sum(jnp.where(onehot < 1, jnp.exp(s_init * logits), 0.0)) / x.shape[0]
    theta_sel = jnp.sum(jnp.where(onehot == 1, theta, 0.0), axis=-1)
    theta_med = jnp.sort(theta_sel)[(x.shape[0] - 1) // 2]
    s_new = jnp.log(b_avg) / jnp.cos(jnp.minimum(jnp.float32(math.pi / 4), theta_med))
    return s_new * logits


if __name__ == "__main__":
    # Small shapes chosen so the kernel actually tiles (2 batch tiles x 2 class
    # tiles) and exercises both the feature-padding and class-padding paths.
    batch, num_feat, num_classes = 16, 120, 250
    tb_demo, tc_demo = 8, 128

    key = jax.random.PRNGKey(0)
    kx, kw, kl = jax.random.split(key, 3)

    bound = math.sqrt(6.0 / (num_feat + num_classes))   # xavier_uniform_-style init
    W = jax.random.uniform(kw, (num_classes, num_feat),
                           dtype=jnp.float32, minval=-bound, maxval=bound)
    x = jax.random.normal(kx, (batch, num_feat), dtype=jnp.float32)
    label = jax.random.randint(kl, (batch,), 0, num_classes, dtype=jnp.int32)

    s_init = math.sqrt(2.0) * math.log(num_classes - 1)

    infer_fn = jax.jit(functools.partial(adacos_forward, label=None, s_init=s_init))
    train_fn = jax.jit(functools.partial(adacos_forward, s_init=s_init,
                                         tb=tb_demo, tc=tc_demo))
    train_bf16_fn = jax.jit(functools.partial(adacos_forward, s_init=s_init,
                                              tb=tb_demo, tc=tc_demo,
                                              mxu_dtype=jnp.bfloat16))

    # Inference path (label=None): plain cosine logits, auto tiling.
    logits = jax.block_until_ready(infer_fn(x, W))

    # Training path (label given): adaptive scale update + scaled logits.
    out, s_new = train_fn(x, W, label)
    out = jax.block_until_ready(out)

    # bf16-MXU training path (v6e/v7x recommendation): validated with loose tolerance.
    out_bf16, _ = train_bf16_fn(x, W, label)
    out_bf16 = jax.block_until_ready(out_bf16)

    ref_logits = _reference_forward(x, W, None, s_init)
    ref_out = _reference_forward(x, W, label, s_init)
    assert logits.shape == (batch, num_classes)
    assert out.shape == (batch, num_classes)
    assert jnp.allclose(logits, ref_logits, atol=1e-5, rtol=1e-5), "logits mismatch"
    assert jnp.allclose(out, ref_out, atol=1e-4, rtol=1e-4), "scaled output mismatch"
    assert jnp.allclose(out_bf16, ref_out, atol=3e-1, rtol=0.0), "bf16 output mismatch"

    print("KERNEL_OK")
</pallas_src>

<mosaic_0001>
module attributes {stable_mosaic.version = 11 : i64} {
  func.func @_row_normalize_kernel(%arg0: i32, %arg1: memref<256x128xf32, #tpu.memory_space<vmem>>, %arg2: memref<256x128xf32, #tpu.memory_space<vmem>>) attributes {dimension_semantics = [#tpu.dimension_semantics<parallel>], iteration_bounds = array<i64: 1>, scalar_prefetch = 0 : i64, scratch_operands = 0 : i64, tpu.core_type = #tpu.core_type<tc>, window_params = [{transform_indices = @transform_0, window_bounds = array<i64: 256, 128>}, {transform_indices = @transform_1, window_bounds = array<i64: 256, 128>}]} {
    %c0 = arith.constant 0 : index
    %c0_0 = arith.constant 0 : index
    %0 = vector.load %arg1[%c0, %c0_0] : memref<256x128xf32, #tpu.memory_space<vmem>>, vector<256x128xf32>
    %1 = arith.mulf %0, %0 : vector<256x128xf32>
    %cst = arith.constant dense<0.000000e+00> : vector<256xf32>
    %2 = vector.multi_reduction <add>, %1, %cst [1] : vector<256x128xf32> to vector<256xf32>
    %3 = vector.shape_cast %2 : vector<256xf32> to vector<256x1xf32>
    %cst_1 = arith.constant 1.000000e-24 : f32
    %4 = vector.broadcast %cst_1 : f32 to vector<256x1xf32>
    %5 = arith.maximumf %3, %4 : vector<256x1xf32>
    %6 = math.rsqrt %5 : vector<256x1xf32>
    %7 = vector.broadcast %6 : vector<256x1xf32> to vector<256x128xf32>
    %8 = arith.mulf %0, %7 : vector<256x128xf32>
    %c0_2 = arith.constant 0 : index
    %c0_3 = arith.constant 0 : index
    %9 = vector.load %arg2[%c0_2, %c0_3] : memref<256x128xf32, #tpu.memory_space<vmem>>, vector<256x128xf32>
    tpu.vector_store %arg2[%c0_2, %c0_3], %8 {strides = array<i32>} : memref<256x128xf32, #tpu.memory_space<vmem>>, vector<256x128xf32>,
    return
  }
  func.func @transform_0(%arg0: i32) -> (i32, i32) {
    %c0_i32 = arith.constant 0 : i32
    %c0_i32_0 = arith.constant 0 : i32
    return %arg0, %c0_i32 : i32, i32
  }
  func.func @transform_1(%arg0: i32) -> (i32, i32) {
    %c0_i32 = arith.constant 0 : i32
    %c0_i32_0 = arith.constant 0 : i32
    return %arg0, %c0_i32 : i32, i32
  }
}

module attributes {stable_mosaic.version = 11 : i64} {
  func.func @_adacos_infer_kernel(%arg0: i32, %arg1: i32, %arg2: memref<8x128xf32, #tpu.memory_space<vmem>>, %arg3: memref<128x256xf32, #tpu.memory_space<vmem>>, %arg4: memref<8x256xf32, #tpu.memory_space<vmem>>) attributes {dimension_semantics = [#tpu.dimension_semantics<parallel>, #tpu.dimension_semantics<parallel>], iteration_bounds = array<i64: 2, 1>, scalar_prefetch = 0 : i64, scratch_operands = 0 : i64, tpu.core_type = #tpu.core_type<tc>, window_params = [{transform_indices = @transform_0, window_bounds = array<i64: 8, 128>}, {transform_indices = @transform_1, window_bounds = array<i64: 128, 256>}, {transform_indices = @transform_2, window_bounds = array<i64: 8, 256>}]} {
    %c0 = arith.constant 0 : index
    %c0_0 = arith.constant 0 : index
    %0 = vector.load %arg2[%c0, %c0_0] : memref<8x128xf32, #tpu.memory_space<vmem>>, vector<8x128xf32>
    %c0_1 = arith.constant 0 : index
    %c0_2 = arith.constant 0 : index
    %1 = vector.load %arg3[%c0_1, %c0_2] : memref<128x256xf32, #tpu.memory_space<vmem>>, vector<128x256xf32>
    %cst = arith.constant dense<0.000000e+00> : vector<8x256xf32>
    %2 = tpu.matmul %0, %1, %cst {dimension_numbers = #tpu.dot_dimension_numbers<[1], [0], [0], [1], [0, 0, 1, 1], [], []>} : vector<8x128xf32>, vector<128x256xf32>, vector<8x256xf32> -> vector<8x256xf32>
    %c0_3 = arith.constant 0 : index
    %c0_4 = arith.constant 0 : index
    %3 = vector.load %arg4[%c0_3, %c0_4] : memref<8x256xf32, #tpu.memory_space<vmem>>, vector<8x256xf32>
    tpu.vector_store %arg4[%c0_3, %c0_4], %2 {strides = array<i32>} : memref<8x256xf32, #tpu.memory_space<vmem>>, vector<8x256xf32>,
    return
  }
  func.func @transform_0(%arg0: i32, %arg1: i32) -> (i32, i32) {
    %c0_i32 = arith.constant 0 : i32
    %c0_i32_0 = arith.constant 0 : i32
    return %arg0, %c0_i32 : i32, i32
  }
  func.func @transform_1(%arg0: i32, %arg1: i32) -> (i32, i32) {
    %c0_i32 = arith.constant 0 : i32
    %c0_i32_0 = arith.constant 0 : i32
    return %c0_i32, %arg1 : i32, i32
  }
  func.func @transform_2(%arg0: i32, %arg1: i32) -> (i32, i32) {
    %c0_i32 = arith.constant 0 : i32
    return %arg0, %arg1 : i32, i32
  }
}

module attributes {stable_mosaic.version = 11 : i64} {
  func.func @_row_normalize_kernel(%arg0: i32, %arg1: memref<16x128xf32, #tpu.memory_space<vmem>>, %arg2: memref<16x128xf32, #tpu.memory_space<vmem>>) attributes {dimension_semantics = [#tpu.dimension_semantics<parallel>], iteration_bounds = array<i64: 1>, scalar_prefetch = 0 : i64, scratch_operands = 0 : i64, tpu.core_type = #tpu.core_type<tc>, window_params = [{transform_indices = @transform_0, window_bounds = array<i64: 16, 128>}, {transform_indices = @transform_1, window_bounds = array<i64: 16, 128>}]} {
    %c0 = arith.constant 0 : index
    %c0_0 = arith.constant 0 : index
    %0 = vector.load %arg1[%c0, %c0_0] : memref<16x128xf32, #tpu.memory_space<vmem>>, vector<16x128xf32>
    %1 = arith.mulf %0, %0 : vector<16x128xf32>
    %cst = arith.constant dense<0.000000e+00> : vector<16xf32>
    %2 = vector.multi_reduction <add>, %1, %cst [1] : vector<16x128xf32> to vector<16xf32>
    %3 = vector.shape_cast %2 : vector<16xf32> to vector<16x1xf32>
    %cst_1 = arith.constant 1.000000e-24 : f32
    %4 = vector.broadcast %cst_1 : f32 to vector<16x1xf32>
    %5 = arith.maximumf %3, %4 : vector<16x1xf32>
    %6 = math.rsqrt %5 : vector<16x1xf32>
    %7 = vector.broadcast %6 : vector<16x1xf32> to vector<16x128xf32>
    %8 = arith.mulf %0, %7 : vector<16x128xf32>
    %c0_2 = arith.constant 0 : index
    %c0_3 = arith.constant 0 : index
    %9 = vector.load %arg2[%c0_2, %c0_3] : memref<16x128xf32, #tpu.memory_space<vmem>>, vector<16x128xf32>
    tpu.vector_store %arg2[%c0_2, %c0_3], %8 {strides = array<i32>} : memref<16x128xf32, #tpu.memory_space<vmem>>, vector<16x128xf32>,
    return
  }
  func.func @transform_0(%arg0: i32) -> (i32, i32) {
    %c0_i32 = arith.constant 0 : i32
    %c0_i32_0 = arith.constant 0 : i32
    return %arg0, %c0_i32 : i32, i32
  }
  func.func @transform_1(%arg0: i32) -> (i32, i32) {
    %c0_i32 = arith.constant 0 : i32
    %c0_i32_0 = arith.constant 0 : i32
    return %arg0, %c0_i32 : i32, i32
  }
}

</mosaic_0001>

<bundles_post_ra>
// kernel: adacos_forward.4
= control target key start
LH: loop header
LB: loop body
LE: loop exit
PB: predicated region body
PF: predicated region fallthrough
CT: control target
= control target key end

     0   :  { %s694_s0 = inlined_call_operand.vmem [shape: f32[256,128], index: 0, kind: input, shape index: {}]   ;;  %s695_s1 = inlined_call_operand.vmem [shape: f32[256,128], index: 1, kind: output, shape index: {}]  }
   0x1   :  { %v345_v0 = vld [vmem:[%s694_s0 + $0x10] sm:$0xff]  ;;  %v350_v1 = vld [vmem:[%s694_s0] sm:$0xff]  ;;  %v355_v2 = vld [vmem:[%s694_s0 + $0x18] sm:$0xff] }
   0x2   :  { %v42_v3 = vmul.f32 %v345_v0, %v345_v0  ;;  %v40_v4 = vmul.f32 %v350_v1, %v350_v1  ;;  %v364_v5 = vld [vmem:[%s694_s0 + $0x8] sm:$0xff]  ;;  %v43_v6 = vmul.f32 %v355_v2, %v355_v2  ;;  %v378_v9 = vld [vmem:[%s694_s0 + $0x20] sm:$0xff]  ;;  %v387_v12 = vld [vmem:[%s694_s0 + $0x38] sm:$0xff] }
   0x3   :  { %v41_v7 = vmul.f32 %v364_v5, %v364_v5  ;;  %v373_v8 = vld [vmem:[%s694_s0 + $0x28] sm:$0xff]  ;;  %v44_v11 = vmul.f32 %v378_v9, %v378_v9  ;;  %v392_v13 = vld [vmem:[%s694_s0 + $0x30] sm:$0xff]  ;;  %v47_v14 = vmul.f32 %v387_v12, %v387_v12  ;;  %v406_v17 = vld [vmem:[%s694_s0 + $0x40] sm:$0xff] }
   0x4   :  { %76 = vadd.xlane.f32.xlu1 %v42_v3  ;;  %72 = vadd.xlane.f32.xlu0 %v40_v4  ;;  %v45_v10 = vmul.f32 %v373_v8, %v373_v8  ;;  %v46_v15 = vmul.f32 %v392_v13, %v392_v13  ;;  %v401_v16 = vld [vmem:[%s694_s0 + $0x48] sm:$0xff]  ;;  %v48_v19 = vmul.f32 %v406_v17, %v406_v17  ;;  %v415_v20 = vld [vmem:[%s694_s0 + $0x58] sm:$0xff]  ;;  %v420_v21 = vld [vmem:[%s694_s0 + $0x50] sm:$0xff] }
   0x5   :  { %v49_v18 = vmul.f32 %v401_v16, %v401_v16  ;;  %v51_v22 = vmul.f32 %v415_v20, %v415_v20  ;;  %v50_v23 = vmul.f32 %v420_v21, %v420_v21  ;;  %v429_v24 = vld [vmem:[%s694_s0 + $0x68] sm:$0xff]  ;;  %v434_v25 = vld [vmem:[%s694_s0 + $0x60] sm:$0xff]  ;;  %v443_v28 = vld [vmem:[%s694_s0 + $0x78] sm:$0xff] }
   0x6   :  { %v53_v26 = vmul.f32 %v429_v24, %v429_v24  ;;  %v52_v27 = vmul.f32 %v434_v25, %v434_v25  ;;  %v448_v29 = vld [vmem:[%s694_s0 + $0x70] sm:$0xff]  ;;  %v55_v30 = vmul.f32 %v443_v28, %v443_v28  ;;  %v457_v32 = vld [vmem:[%s694_s0 + $0x88] sm:$0xff]  ;;  %v462_v33 = vld [vmem:[%s694_s0 + $0x80] sm:$0xff] }
   0x7   :  { %v54_v31 = vmul.f32 %v448_v29, %v448_v29  ;;  %v57_v34 = vmul.f32 %v457_v32, %v457_v32  ;;  %v56_v35 = vmul.f32 %v462_v33, %v462_v33  ;;  %v471_v36 = vld [vmem:[%s694_s0 + $0x98] sm:$0xff]  ;;  %v476_v37 = vld [vmem:[%s694_s0 + $0x90] sm:$0xff]  ;;  %v485_v40 = vld [vmem:[%s694_s0 + $0xa8] sm:$0xff] }
   0x8   :  { %78 = vadd.xlane.f32.xlu1 %v43_v6  ;;  %74 = vadd.xlane.f32.xlu0 %v41_v7  ;;  %v59_v38 = vmul.f32 %v471_v36, %v471_v36  ;;  %v58_v39 = vmul.f32 %v476_v37, %v476_v37  ;;  %v490_v41 = vld [vmem:[%s694_s0 + $0xa0] sm:$0xff]  ;;  %v61_v42 = vmul.f32 %v485_v40, %v485_v40  ;;  %v499_v44 = vld [vmem:[%s694_s0 + $0xb8] sm:$0xff]  ;;  %v504_v45 = vld [vmem:[%s694_s0 + $0xb0] sm:$0xff] }
   0x9   :  { %v60_v43 = vmul.f32 %v490_v41, %v490_v41  ;;  %v63_v46 = vmul.f32 %v499_v44, %v499_v44  ;;  %v62_v47 = vmul.f32 %v504_v45, %v504_v45  ;;  %v513_v48 = vld [vmem:[%s694_s0 + $0xc8] sm:$0xff]  ;;  %v518_v49 = vld [vmem:[%s694_s0 + $0xc0] sm:$0xff]  ;;  %v527_v52 = vld [vmem:[%s694_s0 + $0xd8] sm:$0xff] }
   0xa   :  { %v65_v50 = vmul.f32 %v513_v48, %v513_v48  ;;  %v64_v51 = vmul.f32 %v518_v49, %v518_v49  ;;  %v532_v53 = vld [vmem:[%s694_s0 + $0xd0] sm:$0xff]  ;;  %v67_v54 = vmul.f32 %v527_v52, %v527_v52  ;;  %v541_v56 = vld [vmem:[%s694_s0 + $0xe8] sm:$0xff]  ;;  %v546_v57 = vld [vmem:[%s694_s0 + $0xe0] sm:$0xff] }
   0xb   :  { %v66_v55 = vmul.f32 %v532_v53, %v532_v53  ;;  %v69_v58 = vmul.f32 %v541_v56, %v541_v56  ;;  %v68_v59 = vmul.f32 %v546_v57, %v546_v57  ;;  %v555_v60 = vld [vmem:[%s694_s0 + $0xf8] sm:$0xff]  ;;  %v560_v61 = vld [vmem:[%s694_s0 + $0xf0] sm:$0xff] }
   0xc   :  { %82 = vadd.xlane.f32.xlu1 %v45_v10  ;;  %80 = vadd.xlane.f32.xlu0 %v44_v11  ;;  %v71_v62 = vmul.f32 %v555_v60, %v555_v60  ;;  %v70_v63 = vmul.f32 %v560_v61, %v560_v61 }
  0x10   :  { %86 = vadd.xlane.f32.xlu1 %v47_v14  ;;  %84 = vadd.xlane.f32.xlu0 %v46_v15 }
  0x14   :  { %90 = vadd.xlane.f32.xlu1 %v49_v18  ;;  %88 = vadd.xlane.f32.xlu0 %v48_v19 }
  0x18   :  { %94 = vadd.xlane.f32.xlu1 %v51_v22  ;;  %92 = vadd.xlane.f32.xlu0 %v50_v23 }
  0x1c   :  { %98 = vadd.xlane.f32.xlu1 %v53_v26  ;;  %96 = vadd.xlane.f32.xlu0 %v52_v27 }
  0x20   :  { %102 = vadd.xlane.f32.xlu1 %v55_v30  ;;  %100 = vadd.xlane.f32.xlu0 %v54_v31 }
  0x24   :  { %106 = vadd.xlane.f32.xlu1 %v57_v34  ;;  %104 = vadd.xlane.f32.xlu0 %v56_v35 }
  0x28   :  { %110 = vadd.xlane.f32.xlu1 %v59_v38  ;;  %108 = vadd.xlane.f32.xlu0 %v58_v39 }
  0x2c   :  { %114 = vadd.xlane.f32.xlu1 %v61_v42  ;;  %112 = vadd.xlane.f32.xlu0 %v60_v43 }
  0x30   :  { %118 = vadd.xlane.f32.xlu1 %v63_v46  ;;  %116 = vadd.xlane.f32.xlu0 %v62_v47 }
  0x34   :  { %122 = vadd.xlane.f32.xlu1 %v65_v50  ;;  %120 = vadd.xlane.f32.xlu0 %v64_v51 }
  0x38   :  { %126 = vadd.xlane.f32.xlu1 %v67_v54  ;;  %124 = vadd.xlane.f32.xlu0 %v66_v55 }
  0x3c   :  { %130 = vadd.xlane.f32.xlu1 %v69_v58  ;;  %128 = vadd.xlane.f32.xlu0 %v68_v59 }
  0x40   :  { %134 = vadd.xlane.f32.xlu1 %v71_v62  ;;  %132 = vadd.xlane.f32.xlu0 %v70_v63 }
  0x91   :  { %v77_v3 = vpop.xlane.xlu1 %76  ;;  %v73_v4 = vpop.xlane.xlu0 %72 }
  0x92   :  { %v138_v6 = vmax.f32 %v77_v3, 1e-24  ;;  %v136_v7 = vmax.f32 %v73_v4, 1e-24 }
  0x94   :  { %268 = vrsqrt.f32 %v138_v6 }
  0x95   :  { %270 = vrsqrt.f32 %v136_v7  ;;  %v79_v10 = vpop.xlane.xlu1 %78  ;;  %v75_v11 = vpop.xlane.xlu0 %74 }
  0x96   :  { %v139_v14 = vmax.f32 %v79_v10, 1e-24  ;;  %v137_v15 = vmax.f32 %v75_v11, 1e-24 }
  0x98   :  { %272 = vrsqrt.f32 %v139_v14 }
  0x99   :  { %274 = vrsqrt.f32 %v137_v15  ;;  %v83_v18 = vpop.xlane.xlu1 %82  ;;  %v81_v19 = vpop.xlane.xlu0 %80 }
  0x9a   :  { %v141_v22 = vmax.f32 %v83_v18, 1e-24  ;;  %v140_v23 = vmax.f32 %v81_v19, 1e-24 }
  0x9c   :  { %276 = vrsqrt.f32 %v141_v22 }
  0x9d   :  { %278 = vrsqrt.f32 %v140_v23  ;;  %v87_v26 = vpop.xlane.xlu1 %86  ;;  %v85_v27 = vpop.xlane.xlu0 %84 }
  0x9e   :  { %v269_v30 = vpop.eup %268  ;;  %v143_v31 = vmax.f32 %v87_v26, 1e-24  ;;  %v142_v34 = vmax.f32 %v85_v27, 1e-24 }
  0x9f   :  { %v271_v35 = vpop.eup %270  ;;  %v202_v38 = vmul.f32 %v269_v30, %v345_v0 }
  0xa0   :  { %v200_v39 = vmul.f32 %v271_v35, %v350_v1  ;;  %280 = vrsqrt.f32 %v143_v31 }
  0xa1   :  { %234 = vst [vmem:[%s695_s1 + $0x10] sm:$0xff] %v202_v38  ;;  %282 = vrsqrt.f32 %v142_v34  ;;  %v91_v42 = vpop.xlane.xlu1 %90  ;;  %v89_v43 = vpop.xlane.xlu0 %88 }
  0xa2   :  { %v273_v46 = vpop.eup %272  ;;  %232 = vst [vmem:[%s695_s1] sm:$0xff] %v200_v39  ;;  %v145_v47 = vmax.f32 %v91_v42, 1e-24  ;;  %v144_v50 = vmax.f32 %v89_v43, 1e-24 }
  0xa3   :  { %v275_v51 = vpop.eup %274  ;;  %v203_v0 = vmul.f32 %v273_v46, %v355_v2 }
  0xa4   :  { %v201_v1 = vmul.f32 %v275_v51, %v364_v5  ;;  %284 = vrsqrt.f32 %v145_v47 }
  0xa5   :  { %235 = vst [vmem:[%s695_s1 + $0x18] sm:$0xff] %v203_v0  ;;  %286 = vrsqrt.f32 %v144_v50  ;;  %v95_v54 = vpop.xlane.xlu1 %94  ;;  %v93_v55 = vpop.xlane.xlu0 %92 }
  0xa6   :  { %v277_v58 = vpop.eup %276  ;;  %233 = vst [vmem:[%s695_s1 + $0x8] sm:$0xff] %v201_v1  ;;  %v147_v59 = vmax.f32 %v95_v54, 1e-24  ;;  %v146_v62 = vmax.f32 %v93_v55, 1e-24 }
  0xa7   :  { %v279_v63 = vpop.eup %278  ;;  %v205_v2 = vmul.f32 %v277_v58, %v373_v8 }
  0xa8   :  { %v204_v5 = vmul.f32 %v279_v63, %v378_v9  ;;  %288 = vrsqrt.f32 %v147_v59 }
  0xa9   :  { %237 = vst [vmem:[%s695_s1 + $0x28] sm:$0xff] %v205_v2  ;;  %290 = vrsqrt.f32 %v146_v62  ;;  %v99_v3 = vpop.xlane.xlu1 %98  ;;  %v97_v4 = vpop.xlane.xlu0 %96 }
  0xaa   :  { %v281_v6 = vpop.eup %280  ;;  %236 = vst [vmem:[%s695_s1 + $0x20] sm:$0xff] %v204_v5  ;;  %v149_v7 = vmax.f32 %v99_v3, 1e-24  ;;  %v148_v10 = vmax.f32 %v97_v4, 1e-24 }
  0xab   :  { %v283_v11 = vpop.eup %282  ;;  %v207_v8 = vmul.f32 %v281_v6, %v387_v12 }
  0xac   :  { %v206_v9 = vmul.f32 %v283_v11, %v392_v13  ;;  %292 = vrsqrt.f32 %v149_v7 }
  0xad   :  { %239 = vst [vmem:[%s695_s1 + $0x38] sm:$0xff] %v207_v8  ;;  %294 = vrsqrt.f32 %v148_v10  ;;  %v103_v14 = vpop.xlane.xlu1 %102  ;;  %v101_v15 = vpop.xlane.xlu0 %100 }
  0xae   :  { %v285_v18 = vpop.eup %284  ;;  %238 = vst [vmem:[%s695_s1 + $0x30] sm:$0xff] %v206_v9  ;;  %v151_v19 = vmax.f32 %v103_v14, 1e-24  ;;  %v150_v22 = vmax.f32 %v101_v15, 1e-24 }
  0xaf   :  { %v287_v23 = vpop.eup %286  ;;  %v209_v12 = vmul.f32 %v285_v18, %v401_v16 }
  0xb0   :  { %v208_v13 = vmul.f32 %v287_v23, %v406_v17  ;;  %296 = vrsqrt.f32 %v151_v19 }
  0xb1   :  { %241 = vst [vmem:[%s695_s1 + $0x48] sm:$0xff] %v209_v12  ;;  %298 = vrsqrt.f32 %v150_v22  ;;  %v107_v26 = vpop.xlane.xlu1 %106  ;;  %v105_v27 = vpop.xlane.xlu0 %104 }
  0xb2   :  { %v289_v30 = vpop.eup %288  ;;  %240 = vst [vmem:[%s695_s1 + $0x40] sm:$0xff] %v208_v13  ;;  %v153_v31 = vmax.f32 %v107_v26, 1e-24  ;;  %v152_v34 = vmax.f32 %v105_v27, 1e-24 }
  0xb3   :  { %v291_v35 = vpop.eup %290  ;;  %v211_v16 = vmul.f32 %v289_v30, %v415_v20 }
  0xb4   :  { %v210_v17 = vmul.f32 %v291_v35, %v420_v21  ;;  %300 = vrsqrt.f32 %v153_v31 }
  0xb5   :  { %243 = vst [vmem:[%s695_s1 + $0x58] sm:$0xff] %v211_v16  ;;  %302 = vrsqrt.f32 %v152_v34  ;;  %v111_v38 = vpop.xlane.xlu1 %110  ;;  %v109_v39 = vpop.xlane.xlu0 %108 }
  0xb6   :  { %v293_v42 = vpop.eup %292  ;;  %242 = vst [vmem:[%s695_s1 + $0x50] sm:$0xff] %v210_v17  ;;  %v155_v43 = vmax.f32 %v111_v38, 1e-24  ;;  %v154_v46 = vmax.f32 %v109_v39, 1e-24 }
  0xb7   :  { %v295_v47 = vpop.eup %294  ;;  %v213_v20 = vmul.f32 %v293_v42, %v429_v24 }
  0xb8   :  { %v212_v21 = vmul.f32 %v295_v47, %v434_v25  ;;  %304 = vrsqrt.f32 %v155_v43 }
  0xb9   :  { %245 = vst [vmem:[%s695_s1 + $0x68] sm:$0xff] %v213_v20  ;;  %306 = vrsqrt.f32 %v154_v46  ;;  %v115_v50 = vpop.xlane.xlu1 %114  ;;  %v113_v51 = vpop.xlane.xlu0 %112 }
  0xba   :  { %v297_v0 = vpop.eup %296  ;;  %244 = vst [vmem:[%s695_s1 + $0x60] sm:$0xff] %v212_v21  ;;  %v157_v1 = vmax.f32 %v115_v50, 1e-24  ;;  %v156_v54 = vmax.f32 %v113_v51, 1e-24 }
  0xbb   :  { %v299_v55 = vpop.eup %298  ;;  %v215_v24 = vmul.f32 %v297_v0, %v443_v28 }
  0xbc   :  { %v214_v25 = vmul.f32 %v299_v55, %v448_v29  ;;  %308 = vrsqrt.f32 %v157_v1 }
  0xbd   :  { %247 = vst [vmem:[%s695_s1 + $0x78] sm:$0xff] %v215_v24  ;;  %310 = vrsqrt.f32 %v156_v54  ;;  %v119_v58 = vpop.xlane.xlu1 %118  ;;  %v117_v59 = vpop.xlane.xlu0 %116 }
  0xbe   :  { %v301_v62 = vpop.eup %300  ;;  %246 = vst [vmem:[%s695_s1 + $0x70] sm:$0xff] %v214_v25  ;;  %v159_v63 = vmax.f32 %v119_v58, 1e-24  ;;  %v158_v2 = vmax.f32 %v117_v59, 1e-24 }
  0xbf   :  { %v303_v5 = vpop.eup %302  ;;  %v217_v28 = vmul.f32 %v301_v62, %v457_v32 }
  0xc0   :  { %v216_v29 = vmul.f32 %v303_v5, %v462_v33  ;;  %312 = vrsqrt.f32 %v159_v63 }
  0xc1   :  { %249 = vst [vmem:[%s695_s1 + $0x88] sm:$0xff] %v217_v28  ;;  %314 = vrsqrt.f32 %v158_v2  ;;  %v123_v3 = vpop.xlane.xlu1 %122  ;;  %v121_v4 = vpop.xlane.xlu0 %120 }
  0xc2   :  { %v305_v6 = vpop.eup %304  ;;  %248 = vst [vmem:[%s695_s1 + $0x80] sm:$0xff] %v216_v29  ;;  %v161_v7 = vmax.f32 %v123_v3, 1e-24  ;;  %v160_v10 = vmax.f32 %v121_v4, 1e-24 }
  0xc3   :  { %v307_v11 = vpop.eup %306  ;;  %v219_v32 = vmul.f32 %v305_v6, %v471_v36 }
  0xc4   :  { %v218_v33 = vmul.f32 %v307_v11, %v476_v37  ;;  %316 = vrsqrt.f32 %v161_v7 }
  0xc5   :  { %251 = vst [vmem:[%s695_s1 + $0x98] sm:$0xff] %v219_v32  ;;  %318 = vrsqrt.f32 %v160_v10  ;;  %v127_v8 = vpop.xlane.xlu1 %126  ;;  %v125_v9 = vpop.xlane.xlu0 %124 }
  0xc6   :  { %v309_v14 = vpop.eup %308  ;;  %250 = vst [vmem:[%s695_s1 + $0x90] sm:$0xff] %v218_v33  ;;  %v163_v15 = vmax.f32 %v127_v8, 1e-24  ;;  %v162_v18 = vmax.f32 %v125_v9, 1e-24 }
  0xc7   :  { %v311_v19 = vpop.eup %310  ;;  %v221_v36 = vmul.f32 %v309_v14, %v485_v40 }
  0xc8   :  { %v220_v37 = vmul.f32 %v311_v19, %v490_v41  ;;  %320 = vrsqrt.f32 %v163_v15 }
  0xc9   :  { %253 = vst [vmem:[%s695_s1 + $0xa8] sm:$0xff] %v221_v36  ;;  %322 = vrsqrt.f32 %v162_v18  ;;  %v131_v22 = vpop.xlane.xlu1 %130  ;;  %v129_v23 = vpop.xlane.xlu0 %128 }
  0xca   :  { %v313_v12 = vpop.eup %312  ;;  %252 = vst [vmem:[%s695_s1 + $0xa0] sm:$0xff] %v220_v37  ;;  %v165_v13 = vmax.f32 %v131_v22, 1e-24  ;;  %v164_v26 = vmax.f32 %v129_v23, 1e-24 }
  0xcb   :  { %v315_v27 = vpop.eup %314  ;;  %v223_v40 = vmul.f32 %v313_v12, %v499_v44 }
  0xcc   :  { %v222_v41 = vmul.f32 %v315_v27, %v504_v45  ;;  %324 = vrsqrt.f32 %v165_v13 }
  0xcd   :  { %255 = vst [vmem:[%s695_s1 + $0xb8] sm:$0xff] %v223_v40  ;;  %326 = vrsqrt.f32 %v164_v26  ;;  %v135_v30 = vpop.xlane.xlu1 %134  ;;  %v133_v31 = vpop.xlane.xlu0 %132 }
  0xce   :  { %v317_v34 = vpop.eup %316  ;;  %254 = vst [vmem:[%s695_s1 + $0xb0] sm:$0xff] %v222_v41  ;;  %v167_v35 = vmax.f32 %v135_v30, 1e-24  ;;  %v166_v16 = vmax.f32 %v133_v31, 1e-24 }
  0xcf   :  { %v319_v17 = vpop.eup %318  ;;  %v225_v44 = vmul.f32 %v317_v34, %v513_v48 }
  0xd0   :  { %v224_v45 = vmul.f32 %v319_v17, %v518_v49  ;;  %328 = vrsqrt.f32 %v167_v35 }
  0xd1   :  { %257 = vst [vmem:[%s695_s1 + $0xc8] sm:$0xff] %v225_v44  ;;  %330 = vrsqrt.f32 %v166_v16 }
  0xd2   :  { %v321_v38 = vpop.eup %320  ;;  %256 = vst [vmem:[%s695_s1 + $0xc0] sm:$0xff] %v224_v45 }
  0xd3   :  { %v323_v39 = vpop.eup %322  ;;  %v227_v42 = vmul.f32 %v321_v38, %v527_v52 }
  0xd4   :  { %v226_v43 = vmul.f32 %v323_v39, %v532_v53 }
  0xd5   :  { %259 = vst [vmem:[%s695_s1 + $0xd8] sm:$0xff] %v227_v42 }
  0xd6   :  { %v325_v48 = vpop.eup %324  ;;  %258 = vst [vmem:[%s695_s1 + $0xd0] sm:$0xff] %v226_v43 }
  0xd7   :  { %v327_v49 = vpop.eup %326  ;;  %v229_v46 = vmul.f32 %v325_v48, %v541_v56 }
  0xd8   :  { %v228_v47 = vmul.f32 %v327_v49, %v546_v57 }
  0xd9   :  { %261 = vst [vmem:[%s695_s1 + $0xe8] sm:$0xff] %v229_v46 }
  0xda   :  { %v329_v52 = vpop.eup %328  ;;  %260 = vst [vmem:[%s695_s1 + $0xe0] sm:$0xff] %v228_v47 }
  0xdb   :  { %v331_v53 = vpop.eup %330  ;;  %v231_v20 = vmul.f32 %v329_v52, %v555_v60 }
  0xdc   :  { %v230_v21 = vmul.f32 %v331_v53, %v560_v61 }
  0xdd   :  { %263 = vst [vmem:[%s695_s1 + $0xf8] sm:$0xff] %v231_v20 }
  0xde   :  { %262 = vst [vmem:[%s695_s1 + $0xf0] sm:$0xff] %v230_v21 }

// kernel: adacos_forward.3
= control target key start
LH: loop header
LB: loop body
LE: loop exit
PB: predicated region body
PF: predicated region fallthrough
CT: control target
= control target key end

     0   :  { %s54_s0 = inlined_call_operand.vmem [shape: f32[16,128], index: 0, kind: input, shape index: {}]   ;;  %s55_s1 = inlined_call_operand.vmem [shape: f32[16,128], index: 1, kind: output, shape index: {}]  }
   0x1   :  { %v8_v0 = vld [vmem:[%s54_s0] sm:$0xff]  ;;  %v9_v1 = vld [vmem:[%s54_s0 + $0x8] sm:$0xff] }
   0x2   :  { %v10_v2 = vmul.f32 %v8_v0, %v8_v0  ;;  %v11_v3 = vmul.f32 %v9_v1, %v9_v1 }
   0x4   :  { %12 = vadd.xlane.f32.xlu0 %v10_v2 }
   0x8   :  { %14 = vadd.xlane.f32.xlu0 %v11_v3 }
  0x91   :  { %v13_v4 = vpop.xlane.xlu0 %12 }
  0x92   :  { %v16_v5 = vmax.f32 %v13_v4, 1e-24 }
  0x94   :  { %28 = vrsqrt.f32 %v16_v5 }
  0x95   :  { %v15_v6 = vpop.xlane.xlu0 %14 }
  0x96   :  { %v17_v7 = vmax.f32 %v15_v6, 1e-24 }
  0x98   :  { %30 = vrsqrt.f32 %v17_v7 }
  0x9e   :  { %v29_v8 = vpop.eup %28 }
  0x9f   :  { %v20_v9 = vmul.f32 %v29_v8, %v8_v0 }
  0xa1   :  { %22 = vst [vmem:[%s55_s1] sm:$0xff] %v20_v9 }
  0xa2   :  { %v31_v10 = vpop.eup %30 }
  0xa3   :  { %v21_v11 = vmul.f32 %v31_v10, %v9_v1 }
  0xa5   :  { %23 = vst [vmem:[%s55_s1 + $0x8] sm:$0xff] %v21_v11 }

// kernel: adacos_forward.5
= control target key start
LH: loop header
LB: loop body
LE: loop exit
PB: predicated region body
PF: predicated region fallthrough
CT: control target
= control target key end

     0   :  { %7 = vsyncpa [#allocation3], 0  ;;  %s791_s0 = inlined_call_operand.vmem [shape: f32[16,128], index: 0, kind: input, shape index: {}]   ;;  %s792_s1 = inlined_call_operand.vmem [shape: f32[128,256], index: 1, kind: input, shape index: {}]   ;;  %s793_s2 = inlined_call_operand.hbm [shape: f32[16,256], index: 2, kind: output, shape index: {}]  }
   0x1   :  { %9 = vsyncpa [#allocation3 + $0x1], 0  ;;  %s583_s9 = smov 0   ;;  %s585_s10 = smov 0  }
   0x2   :  { %s587_s11 = smov 0   ;;  %s589_s12 = smov 0  }
   0x3   :  { %s591_s13 = smov 0   ;;  %s593_s14 = smov 0  }
   0x4 LB: > { %s384_s15 = sadd.s32 4294967295, %s564_s14   ;;  %s385_s16 = sadd.s32 4294967294, %s564_s14   ;;  %s564_s14 = sphi %s593_s14, %s15_s14   ;;  %s560_s13 = sphi %s591_s13, %s800_s13   ;;  %s556_s12 = sphi %s589_s12, %s799_s12   ;;  %s552_s11 = sphi %s587_s11, %s798_s11   ;;  %s548_s10 = sphi %s585_s10, %s797_s10   ;;  %s544_s9 = sphi %s583_s9, %s796_s9  }
   0x5   : > { %s27_s17 = sadd.s32 1, %s560_s13  ;;  %s88_s18 = sadd.s32 1, %s552_s11 }
   0x6   : > { %p29_p0 = scmp.ge.s32.totalorder %s27_s17, 2  ;;  %p98_p1 = scmp.ne.s32.totalorder %s552_s11, %s548_s10 }
   0x7   : > { %p99_p2 = scmp.eq.s32.totalorder %s384_s15, 1  ;;  %p104_p3 = scmp.ne.s32.totalorder %s548_s10, %s544_s9 }
   0x8   : > { %s802_s17 = smov (%p29_p0, %s27_s17), 0  ;;  %p105_p5 = scmp.eq.s32.totalorder %s385_s16, 1 }
   0x9   : > { %p623_p4 = por %p99_p2, %p98_p1  ;;  %s83_s20 = ssub.s32 %s560_s13, %s802_s17 }
   0xa   : > { %p389_p6 = scmp.ge.s32.totalorder %s564_s14, 1  ;;  %p86_p7 = scmp.eq.s32.totalorder %s83_s20, 0 }
   0xb   : > { %p630_p8 = por %p105_p5, %p104_p3  ;;  %p139_p9 = scmp.lt.s32.totalorder %s564_s14, 3 }
   0xc   : > { %s636_s22 = scalar_select %p86_p7, %s552_s11, %s88_s18  }
   0xd   : > { %p140_p10 = pnand %p389_p6, %p139_p9 }
   0xe   : > { %v178_v0 = vld [vmem:[%s792_s1 + $0x8] sm:$0xff] (!%p140_p10)  ;;  %v180_v1 = vld [vmem:[%s792_s1 + $0x18] sm:$0xff] (!%p140_p10)  ;;  %v177_v2 = vld [vmem:[%s792_s1] sm:$0xff] (!%p140_p10)  ;;  %v566_v7 = vmov (!%p140_p10), 0.0   ;;  %p165_p11 = scmp.lt.s32.totalorder (!%p140_p10), %s556_s12, 1  ;;  %s162_s16 = sand.u32 (!%p140_p10), 1, %s548_s10  }
   0xf   : > { %143 = sbr.rel (%p140_p10) target bundleno = 276 (0x114), region = 28  ;;  %v398_v3 = vpack.c.bf16 (!%p140_p10), %v180_v1, %v178_v0  ;;  %v179_v4 = vld [vmem:[%s792_s1 + $0x10] sm:$0xff] (!%p140_p10)  ;;  %v182_v5 = vld [vmem:[%s792_s1 + $0x28] sm:$0xff] (!%p140_p10)  ;;  %v184_v6 = vld [vmem:[%s792_s1 + $0x38] sm:$0xff] (!%p140_p10)  ;;  %273 = vmatprep.mubr.f32.mxu0 (!%p140_p10), %v566_v7  ;;  %s390_s18 = sshll.u32 (!%p140_p10), %s162_s16, 4 }
  0x10   : > { %v400_v8 = vpack.c.bf16 (!%p140_p10), %v179_v4, %v177_v2  ;;  %v402_v9 = vpack.c.bf16 (!%p140_p10), %v184_v6, %v182_v5  ;;  %v181_v10 = vld [vmem:[%s792_s1 + $0x20] sm:$0xff] (!%p140_p10)  ;;  %v183_v11 = vld [vmem:[%s792_s1 + $0x30] sm:$0xff] (!%p140_p10)  ;;  %v186_v12 = vld [vmem:[%s792_s1 + $0x48] sm:$0xff] (!%p140_p10)  ;;  %s164_s20 = scalar_lea.vmem (!%p140_p10), [#allocation2], %s390_s18  ;;  %s397_s24 = sshll.u32 (!%p140_p10), %s556_s12, 8 }
  0x11   : > { %399 = vmatprep.subr.bf16.mxu0 (!%p140_p10), %v398_v3  ;;  %v188_v13 = vld [vmem:[%s792_s1 + $0x58] sm:$0xff] (!%p140_p10)  ;;  %v404_v14 = vpack.c.bf16 (!%p140_p10), %v183_v11, %v181_v10  ;;  %v185_v16 = vld [vmem:[%s792_s1 + $0x40] sm:$0xff] (!%p140_p10)  ;;  %v187_v17 = vld [vmem:[%s792_s1 + $0x50] sm:$0xff] (!%p140_p10)  ;;  %s299_s23 = sshll.u32 (!%p140_p10), %s164_s20, 4  ;;  %s746_s27 = scalar_lea.hbm (!%p140_p10), %s793_s2, %s397_s24  ;;  %s741_s23 = int_to_ptr.vmem [resolvable:$true] %s299_s23 }
  0x12   : > { %401 = vmatpush1.bf16.msra.mxu0 (!%p140_p10), %v400_v8  ;;  %v406_v15 = vpack.c.bf16 (!%p140_p10), %v188_v13, %v186_v12  ;;  %v190_v18 = vld [vmem:[%s792_s1 + $0x68] sm:$0xff] (!%p140_p10)  ;;  %v192_v19 = vld [vmem:[%s792_s1 + $0x78] sm:$0xff] (!%p140_p10)  ;;  %v408_v20 = vpack.c.bf16 (!%p140_p10), %v187_v17, %v185_v16  ;;  %v189_v22 = vld [vmem:[%s792_s1 + $0x60] sm:$0xff] (!%p140_p10)  ;;  %s283_s28 = scalar_lea.sflag (!%p140_p10), [#allocation3], %s162_s16 }
  0x13   : > { %403 = vmatprep.subr.bf16.mxu0 (!%p140_p10), %v402_v9  ;;  %v410_v21 = vpack.c.bf16 (!%p140_p10), %v192_v19, %v190_v18  ;;  %v191_v23 = vld [vmem:[%s792_s1 + $0x70] sm:$0xff] (!%p140_p10)  ;;  %v194_v24 = vld [vmem:[%s792_s1 + $0x88] sm:$0xff] (!%p140_p10)  ;;  %v196_v25 = vld [vmem:[%s792_s1 + $0x98] sm:$0xff] (!%p140_p10) }
  0x14   : > { %v412_v26 = vpack.c.bf16 (!%p140_p10), %v191_v23, %v189_v22  ;;  %v414_v27 = vpack.c.bf16 (!%p140_p10), %v196_v25, %v194_v24  ;;  %v193_v28 = vld [vmem:[%s792_s1 + $0x80] sm:$0xff] (!%p140_p10)  ;;  %v195_v29 = vld [vmem:[%s792_s1 + $0x90] sm:$0xff] (!%p140_p10)  ;;  %v198_v30 = vld [vmem:[%s792_s1 + $0xa8] sm:$0xff] (!%p140_p10) }
  0x15   : > { %v200_v31 = vld [vmem:[%s792_s1 + $0xb8] sm:$0xff] (!%p140_p10)  ;;  %v416_v32 = vpack.c.bf16 (!%p140_p10), %v195_v29, %v193_v28  ;;  %v197_v34 = vld [vmem:[%s792_s1 + $0xa0] sm:$0xff] (!%p140_p10)  ;;  %v199_v35 = vld [vmem:[%s792_s1 + $0xb0] sm:$0xff] (!%p140_p10) }
  0x16   : > { %405 = vmatpush1.bf16.msra.mxu0 %v404_v14  ;;  %v418_v33 = vpack.c.bf16 %v200_v31, %v198_v30  ;;  %v202_v36 = vld [vmem:[%s792_s1 + $0xc8] sm:$0xff]  ;;  %v204_v37 = vld [vmem:[%s792_s1 + $0xd8] sm:$0xff]  ;;  %v420_v38 = vpack.c.bf16 %v199_v35, %v197_v34  ;;  %v201_v40 = vld [vmem:[%s792_s1 + $0xc0] sm:$0xff]  ;;  %s166_s29 = scalar_select %p165_p11, %s556_s12, 1 }
  0x17   : > { %407 = vmatprep.subr.bf16.mxu0 %v406_v15  ;;  %v422_v39 = vpack.c.bf16 %v204_v37, %v202_v36  ;;  %v203_v41 = vld [vmem:[%s792_s1 + $0xd0] sm:$0xff]  ;;  %v206_v42 = vld [vmem:[%s792_s1 + $0xe8] sm:$0xff]  ;;  %v208_v43 = vld [vmem:[%s792_s1 + $0xf8] sm:$0xff]  ;;  %s567_s12 = smov [#allocation2]  }
  0x18   : > { %v424_v44 = vpack.c.bf16 %v203_v41, %v201_v40  ;;  %v426_v45 = vpack.c.bf16 %v208_v43, %v206_v42  ;;  %v205_v46 = vld [vmem:[%s792_s1 + $0xe0] sm:$0xff]  ;;  %v207_v47 = vld [vmem:[%s792_s1 + $0xf0] sm:$0xff]  ;;  %s391_s6 = sshll.u32 %s166_s29, 3  ;;  %s486_s29 = scalar_lea.vmem %s741_s23, 256 }
  0x19   : > { %v428_v48 = vpack.c.bf16 %v207_v47, %v205_v46  ;;  %s168_s15 = scalar_lea.vmem %s791_s0, %s391_s6  ;;  %p487_p12 = scmp.ne.s32.totalorder %s741_s23, %s486_s29 }
  0x1a   : > { %409 = vmatpush1.bf16.msra.mxu0 %v408_v20  ;;  %v176_v49 = vld [vmem:[%s168_s15] sm:$0xff]  ;;  %s490_s30 = sshll.u32 %s567_s12, 4  ;;  %s491_s30 = int_to_ptr.vmem [resolvable:$false] %s490_s30 }
  0x1b   : > { %411 = vmatprep.subr.bf16.mxu0 %v410_v21  ;;  %p488_p13 = pnand %p487_p12, %p623_p4  ;;  %s492_s3 = scalar_lea.vmem %s491_s30, 512 }
  0x1c   : > { %p493_p1 = scmp.lt.s32.totalorder %s741_s23, %s491_s30  ;;  %p494_p2 = scmp.lt.s32.totalorder %s492_s3, %s486_s29 }
  0x1d   : > { %p489_p0 = pneg %p488_p13 }
  0x1e   : > { %413 = vmatpush1.bf16.msra.mxu0 %v412_v26  ;;  %p495_p3 = por %p494_p2, %p493_p1 }
  0x1f   : > { %415 = vmatprep.subr.bf16.mxu0 %v414_v27 }
  0x20   : > { %p496_p5 = pnand %p495_p3, %p489_p0 }
  0x22   : > { %417 = vmatpush1.bf16.msra.mxu0 %v416_v32 }
  0x23   : > { %419 = vmatprep.subr.bf16.mxu0 %v418_v33 }
  0x26   : > { %421 = vmatpush1.bf16.msra.mxu0 %v420_v38 }
  0x27   : > { %423 = vmatprep.subr.bf16.mxu0 %v422_v39 }
  0x2a   : > { %425 = vmatpush1.bf16.msra.mxu0 %v424_v44 }
  0x2b   : > { %427 = vmatprep.subr.bf16.mxu0 %v426_v45 }
  0x2e   : > { %429 = vmatpush1.bf16.msra.mxu0 %v428_v48 }
  0x31   : > { %274 = vmatmul.mubr.f32.vlgmr.msra.gmra.mrb[0].mxu0 %v176_v49 }
 0x104   : > { %v275_v50 = vpop.f32.mrb[0].mxu0 }
 0x105   : > { %280 = vst [vmem:[%s164_s20] sm:$0xff] %v275_v50  ;;  %v277_v51 = vpop.f32.mrb[1].mxu0 }
 0x106   : > { %281 = vst [vmem:[%s164_s20 + $0x8] sm:$0xff] %v277_v51 }
 0x107   : > { %499 = shalt.err (!%p496_p5)
}
 0x108   : > { %s500_s4 = scalar_lea.hbm %s746_s27, 256  ;;  %s504_s7 = scalar_lea.hbm %s793_s2, 512 }
 0x109   : > { %p501_p6 = scmp.ne.s32.totalorder %s746_s27, %s500_s4  ;;  %p505_p10 = scmp.lt.u32.totalorder %s746_s27, %s793_s2 }
 0x10a   : > { %p506_p11 = scmp.lt.u32.totalorder %s504_s7, %s500_s4  ;;  %p508_p13 = scmp.lt.u32.totalorder %s500_s4, %s746_s27 }
 0x10b   : > { %p502_p7 = pnand %p501_p6, %p623_p4 }
 0x10c   : > { %p507_p12 = por %p506_p11, %p505_p10 }
 0x10d   : > { %p503_p9 = pneg %p502_p7 }
 0x10e   : > { %p509_p0 = por %p508_p13, %p507_p12 }
 0x110   : > { %p510_p1 = pnand %p509_p0, %p503_p9 }
 0x112   : > { %513 = shalt.err (!%p510_p1)
}
 0x113   : > { %430 = dma.vmem_to_hbm [thread:$0]  (%p623_p4), %s741_s23, 256, %s746_s27, %s283_s28  }
 0x114 PF: > { %p436_p2 = scmp.ge.s32.totalorder %s564_s14, 2  ;;  %s311_s16 = sand.u32 1, %s544_s9  }
 0x115   : > { %s312_s18 = scalar_lea.sflag [#allocation3], %s311_s16 }
 0x116   : > { %p433_p3 = pnand %p436_p2, %p630_p8 }
 0x118   : > { %539 = dma.done.wait (!%p433_p3), %s312_s18, 256  }
 0x119   : > { %541 = vsyncadd (!%p433_p3), %s312_s18, 4294967040  ;;  %s15_s14 = sadd.s32 1, %s564_s14   ;;  %s796_s9 = smov %s548_s10 }
 0x11a   : > { %p12_p5 = scmp.ge.s32.totalorder %s15_s14, 4   ;;  %s797_s10 = smov %s552_s11 }
 0x11b   : > { %s798_s11 = smov %s636_s22  ;;  %s799_s12 = smov %s560_s13 }
 0x11c   : > { %s800_s13 = smov %s802_s17  ;;  %14 = sbr.rel (!%p12_p5) target bundleno = 4 (0x4), region = 66 }
 0x123   :  { %317 = vsyncpa [#allocation3], 1 }
 0x124   :  { %319 = vsyncpa [#allocation3 + $0x1], 1 }

</bundles_post_ra>
